<compile_context>
chip_gen: v5e
topology: v5e:2x2
jax: 0.10.0
libtpu: 0.0.40
codegen_flags: <defaults>
</compile_context>

<pallas_src>
import functools

import numpy as np
import jax
import jax.numpy as jnp
from jax.experimental import pallas as pl
from jax.experimental.pallas import tpu as pltpu


def _copy_kernel(x_ref, o_ref):
    # Hot path: move one lane-dense row tile through VMEM unchanged.
    o_ref[...] = x_ref[...]


def _pick_layout(total, itemsize):
    """Choose a lane-dense 2D slab (rows, cols) and a row-tile size.

    cols is a multiple of 128 (prefer 512-1024), rows a multiple of 8, and the
    per-tile footprint is capped so 4 x tile bytes fits comfortably inside the
    smallest scoped-VMEM default across generations (v7x: 32 MiB scoped,
    64 MiB physical).
    """
    for cols in (1024, 512, 256, 128):
        if total % cols:
            continue
        rows = total // cols
        if rows % 8:
            continue
        budget_bytes = 4 * 1024 * 1024  # per tile buffer; 4 bufs -> <= 16 MiB
        max_rows = max(8, (budget_bytes // (cols * itemsize)) // 8 * 8)
        if rows <= max_rows:
            tile_rows = rows
        else:
            # largest divisor of `rows` that is a multiple of 8 and <= max_rows
            tile_rows = 8
            d = 16
            while d <= max_rows:
                if rows % d == 0:
                    tile_rows = d
                d += 8
        return rows, cols, tile_rows
    return None


@functools.partial(jax.jit, static_argnums=1)
def unflatten(x, w):
    """Equivalent of UnFlatten(w).forward(x).

    x: array of shape (B, ...) whose trailing dims flatten to nc * w * w.
    Returns array of shape (B, nc, w, w), same dtype, same element order.
    """
    b = x.shape[0]
    f = int(np.prod(x.shape[1:]))
    assert f % (w * w) == 0, "features must be divisible by w**2"
    nc = f // (w * w)
    total = b * f
    itemsize = jnp.dtype(x.dtype).itemsize

    layout = _pick_layout(total, itemsize)

    if layout is None:
        # Shape does not tile to (8k, 128m): fall back to a single full-extent
        # block (still input/output aliased).  For such odd shapes the truly
        # zero-cost path is just `x.reshape(b, nc, w, w)`.
        x2 = x.reshape(b, f)
        y2 = pl.pallas_call(
            _copy_kernel,
            out_shape=jax.ShapeDtypeStruct((b, f), x.dtype),
            in_specs=[pl.BlockSpec((b, f), lambda: (0, 0))],
            out_specs=pl.BlockSpec((b, f), lambda: (0, 0)),
            input_output_aliases={0: 0},
        )(x2)
        return y2.reshape(b, nc, w, w)

    rows, cols, tile_rows = layout
    # Metadata-only re-layout to a lane-dense, sublane-full slab (row-major
    # element order is preserved, matching torch .view()).
    xs = x.reshape(rows, cols)

    ys = pl.pallas_call(
        _copy_kernel,
        out_shape=jax.ShapeDtypeStruct((rows, cols), x.dtype),
        grid=(rows // tile_rows,),
        in_specs=[pl.BlockSpec((tile_rows, cols), lambda i: (i, 0))],
        out_specs=pl.BlockSpec((tile_rows, cols), lambda i: (i, 0)),
        input_output_aliases={0: 0},
        compiler_params=pltpu.CompilerParams(
            dimension_semantics=("parallel",)),
    )(xs)

    # Metadata-only reshape == torch input.view(B, nc, w, w).
    return ys.reshape(b, nc, w, w)


if __name__ == "__main__":
    # Small deterministic example: B=2, w=16, nc=4 -> flat feature size 1024.
    key = jax.random.PRNGKey(0)
    B, nc, w = 2, 4, 16
    F = nc * w * w
    x = jax.random.normal(key, (B, F), dtype=jnp.float32)
    x_np = np.asarray(x)  # snapshot before any potential aliasing

    y = jax.block_until_ready(unflatten(x, w))

    y_ref = x_np.reshape(B, nc, w, w)
    assert y.shape == (B, nc, w, w), y.shape
    assert y.dtype == x.dtype
    np.testing.assert_array_equal(np.asarray(y), y_ref)

    print("KERNEL_OK")
</pallas_src>

<mosaic_0001>
module attributes {stable_mosaic.version = 11 : i64} {
  func.func @_copy_kernel(%arg0: i32, %arg1: memref<8x256xf32, #tpu.memory_space<vmem>>, %arg2: memref<8x256xf32, #tpu.memory_space<vmem>>) attributes {dimension_semantics = [#tpu.dimension_semantics<parallel>], iteration_bounds = array<i64: 1>, scalar_prefetch = 0 : i64, scratch_operands = 0 : i64, tpu.core_type = #tpu.core_type<tc>, window_params = [{transform_indices = @transform_0, window_bounds = array<i64: 8, 256>}, {transform_indices = @transform_1, window_bounds = array<i64: 8, 256>}]} {
    %c0 = arith.constant 0 : index
    %c0_0 = arith.constant 0 : index
    %0 = vector.load %arg1[%c0, %c0_0] : memref<8x256xf32, #tpu.memory_space<vmem>>, vector<8x256xf32>
    %c0_1 = arith.constant 0 : index
    %c0_2 = arith.constant 0 : index
    %1 = vector.load %arg2[%c0_1, %c0_2] : memref<8x256xf32, #tpu.memory_space<vmem>>, vector<8x256xf32>
    tpu.vector_store %arg2[%c0_1, %c0_2], %0 {strides = array<i32>} : memref<8x256xf32, #tpu.memory_space<vmem>>, vector<8x256xf32>,
    return
  }
  func.func @transform_0(%arg0: i32) -> (i32, i32) {
    %c0_i32 = arith.constant 0 : i32
    %c0_i32_0 = arith.constant 0 : i32
    return %arg0, %c0_i32 : i32, i32
  }
  func.func @transform_1(%arg0: i32) -> (i32, i32) {
    %c0_i32 = arith.constant 0 : i32
    %c0_i32_0 = arith.constant 0 : i32
    return %arg0, %c0_i32 : i32, i32
  }
}

</mosaic_0001>

<bundles_post_ra>
// kernel: unflatten.1
= control target key start
LH: loop header
LB: loop body
LE: loop exit
PB: predicated region body
PF: predicated region fallthrough
CT: control target
= control target key end

     0   :  { %s38_s0 = inlined_call_operand.vmem [shape: f32[8,256], index: 0, kind: input, shape index: {}, may-alias: {0,1}]   ;;  %s39_s1 = inlined_call_operand.vmem [shape: f32[8,256], index: 1, kind: output, shape index: {}, may-alias: {0,1}]  }
   0x1   :  { %v8_v0 = vld [vmem:[%s38_s0] sm:$0xff]  ;;  %v9_v1 = vld [vmem:[%s38_s0 + $0x8] sm:$0xff] }
   0x2   :  { %10 = vst [vmem:[%s39_s1] sm:$0xff] %v8_v0 }
   0x3   :  { %11 = vst [vmem:[%s39_s1 + $0x8] sm:$0xff] %v9_v1 }

</bundles_post_ra>
